<compile_context>
chip_gen: v6e
topology: v6e:2x2x1
jax: 0.10.0
libtpu: 0.0.40
codegen_flags: <defaults>
</compile_context>

<pallas_src>
import jax
import jax.numpy as jnp
from jax.experimental import pallas as pl
from jax.experimental.pallas import tpu as pltpu

IMAGENET_DEFAULT_MEAN = jnp.array([0.485, 0.456, 0.406], dtype=jnp.float32)
IMAGENET_DEFAULT_STD = jnp.array([0.229, 0.224, 0.225], dtype=jnp.float32)

GEM_P = 3.0
GEM_EPS = 1e-6
L2_EPS = 1e-12


def _gem_partial_kernel(x_ref, wct_ref, bc_ref, o_ref, acc_ref):
    """One spatial tile: folded 1x1 conv + ReLU/clamp + cube, accumulate GeM sum.

    No ragged-tail mask here: padded pixels contribute exactly
    max(bc_fold, eps)^3 each, which the wrapper subtracts in the finalize.
    """
    t = pl.program_id(1)
    n_t = pl.num_programs(1)

    @pl.when(t == 0)
    def _():
        acc_ref[...] = jnp.zeros_like(acc_ref)

    x = x_ref[...].astype(jnp.float32)            # (C, TILE_P), cast after DMA
    w = wct_ref[...]                              # (F, C), normalize-folded
    feat = bc_ref[...]                            # (F, 1), broadcasts over lanes
    # C == 3 contraction as three exact-f32 VPU FMAs (see header: at K=3 the MXU
    # path is output-rate-bound and not faster, so the VPU keeps it).
    for c in range(x.shape[0]):
        feat = feat + w[:, c:c + 1] * x[c:c + 1, :]

    # ReLU + GeM clamp fused: max(max(f, 0), eps) == max(f, eps) since eps > 0
    feat = jnp.maximum(feat, GEM_EPS)
    acc_ref[...] += feat * feat * feat            # GeM p = 3, vreg adds only

    @pl.when(t == n_t - 1)
    def _():
        # Single XLU lane-reduce -> per-core GeM partial sum (F, 1).
        o_ref[0] = jnp.sum(acc_ref[...], axis=-1, keepdims=True)


def _default_core_splits():
    """2 on chips with two TensorCores per device (v7x / megacore), else 1."""
    try:
        kind = jax.devices()[0].device_kind.lower()
    except Exception:
        return 1
    if any(tag in kind for tag in ("7x", "v7", "v4", "v5p")):
        return 2
    return 1


def net_embedding(x_hwc, wc, bc, wf, bf, *, tile_p=8192, n_core_splits=None):
    """x_hwc: (H, W, 3) image, float in [0,1] or uint8.  Returns (1, D) unit embedding."""
    H, W, C = x_hwc.shape
    P = H * W
    F = wc.shape[1]
    D = wf.shape[1]

    if n_core_splits is None:
        n_core_splits = _default_core_splits()
    n_core_splits = max(1, min(n_core_splits, pl.cdiv(P, 128)))

    mean = IMAGENET_DEFAULT_MEAN
    std = IMAGENET_DEFAULT_STD

    # Fold ImageNet normalize (and uint8 -> [0,1] scale) into the 1x1-conv weights:
    #   (x*s - mean)/std @ wc == x @ (s*wc/std) + (bc - (mean/std)@wc)
    scale = (1.0 / 255.0) if x_hwc.dtype == jnp.uint8 else 1.0
    wc_fold = wc * (scale / std)[:, None]                                    # (C, F)
    bc_fold = bc.reshape(-1) - jnp.sum((mean / std)[:, None] * wc, axis=0)   # (F,)
    wct = jnp.transpose(wc_fold, (1, 0))                                     # (F, C)
    bc_col = bc_fold.reshape(F, 1)

    # Tile sizing (review): as large as requested to amortize the ~600-cycle
    # grid-step overhead, clamped to the per-core work (multiple of 128) so
    # small images don't over-pad.
    per_core = pl.cdiv(P, n_core_splits)
    tile_p = max(128, min(tile_p, pl.cdiv(per_core, 128) * 128))
    n_tiles = pl.cdiv(pl.cdiv(P, tile_p), n_core_splits)
    p_pad = n_core_splits * n_tiles * tile_p

    # Channel-major layout (== PyTorch permute(2,0,1) with spatial flattened):
    # pixels land lane-dense.  Keep the HBM dtype (uint8 stays uint8, 4x less
    # input DMA); cast to f32 inside the kernel.  Pad only when the tile layout
    # does not already cover P exactly (skips one HBM pass when aligned).
    x_cp = jnp.transpose(x_hwc.reshape(P, C), (1, 0))                        # (C, P)
    if p_pad != P:
        x_cp = jnp.pad(x_cp, ((0, 0), (0, p_pad - P)))

    partials = pl.pallas_call(
        _gem_partial_kernel,
        out_shape=jax.ShapeDtypeStruct((n_core_splits, F, 1), jnp.float32),
        grid=(n_core_splits, n_tiles),
        in_specs=[
            pl.BlockSpec((C, tile_p), lambda c, t: (0, c * n_tiles + t)),
            pl.BlockSpec((F, C), lambda c, t: (0, 0)),       # weights stay resident
            pl.BlockSpec((F, 1), lambda c, t: (0, 0)),
        ],
        out_specs=pl.BlockSpec((1, F, 1), lambda c, t: (c, 0, 0)),
        scratch_shapes=[pltpu.VMEM((F, tile_p), jnp.float32)],
        compiler_params=pltpu.CompilerParams(
            dimension_semantics=("parallel", "arbitrary")),
    )(x_cp, wct, bc_col)

    # Tiny finalize (combine core partials -> mean -> ^(1/p) -> Linear -> L2)
    # on an (F,) vector in plain JAX, so the per-core partials merge outside the
    # kernel (lets v7x's two TensorCores run the spatial reduction in parallel).
    gem_sum = jnp.sum(partials.reshape(n_core_splits, F), axis=0)            # (F,)
    if p_pad != P:
        # Exact contribution of the zero-padded pixels (mask-free kernel).
        gem_sum = gem_sum - (p_pad - P) * jnp.maximum(bc_fold, GEM_EPS) ** 3
    gem_sum = jnp.maximum(gem_sum, (GEM_EPS ** GEM_P) * P)   # guard fp round-off
    gem = (gem_sum / P) ** (1.0 / GEM_P)                                     # (F,)
    out = jnp.dot(gem, wf, precision="highest") + bf.reshape(-1)             # (D,)
    out = out * jax.lax.rsqrt(jnp.maximum(jnp.sum(out * out), L2_EPS * L2_EPS))
    return out.reshape(1, D)


def net_embedding_ref(x_hwc, wc, bc, wf, bf):
    """Pure-JAX reference mirroring the PyTorch forward semantics."""
    x = x_hwc.astype(jnp.float32)
    if x_hwc.dtype == jnp.uint8:
        x = x / 255.0
    x = jnp.transpose(x, (2, 0, 1))                                          # (C,H,W)
    x = (x - IMAGENET_DEFAULT_MEAN[:, None, None]) / \
        IMAGENET_DEFAULT_STD[:, None, None]
    x = x[None]                                                              # (1,C,H,W)
    # stand-in model: 1x1 conv -> ReLU -> GeM -> Linear -> L2 norm
    feat = jnp.einsum("nchw,cf->nfhw", x, wc,
                      precision="highest") + bc.reshape(1, -1, 1, 1)
    feat = jnp.maximum(feat, 0.0)
    feat = jnp.maximum(feat, GEM_EPS)
    gem = jnp.mean(feat ** GEM_P, axis=(2, 3)) ** (1.0 / GEM_P)              # (1,F)
    out = jnp.dot(gem, wf, precision="highest") + bf.reshape(1, -1)          # (1,D)
    return out / jnp.maximum(
        jnp.linalg.norm(out, axis=-1, keepdims=True), L2_EPS)


if __name__ == "__main__":
    key = jax.random.PRNGKey(0)
    # C=3 as the ImageNet normalize implies; P=432 exercises the ragged-tail
    # padding correction (padded to 512) and, on 2-TC chips, the core split.
    H, W, C = 24, 18, 3
    F, D = 64, 32              # synthetic backbone feature dim / embedding dim
    k0, k1, k2, k3, k4 = jax.random.split(key, 5)

    x = jax.random.uniform(k0, (H, W, C), dtype=jnp.float32)   # image in [0,1]
    wc = jax.random.normal(k1, (C, F), dtype=jnp.float32) * 0.1
    bc = jax.random.normal(k2, (F,), dtype=jnp.float32) * 0.01
    wf = jax.random.normal(k3, (F, D), dtype=jnp.float32) * 0.1
    bf = jax.random.normal(k4, (D,), dtype=jnp.float32) * 0.01

    # Defaults: tile_p auto-clamped to the image size, core splits auto per chip.
    out = jax.jit(net_embedding)(x, wc, bc, wf, bf)
    jax.block_until_ready(out)

    ref = net_embedding_ref(x, wc, bc, wf, bf)
    assert out.shape == (1, D)
    assert jnp.allclose(out, ref, atol=1e-4, rtol=1e-4), \
        float(jnp.max(jnp.abs(out - ref)))

    print("KERNEL_OK")
</pallas_src>

<mosaic_0001>
module attributes {stable_mosaic.version = 11 : i64} {
  func.func @_gem_partial_kernel(%arg0: i32, %arg1: i32, %arg2: memref<3x512xf32, #tpu.memory_space<vmem>>, %arg3: memref<64x3xf32, #tpu.memory_space<vmem>>, %arg4: memref<64x1xf32, #tpu.memory_space<vmem>>, %arg5: memref<1x64x1xf32, #tpu.memory_space<vmem>>, %arg6: memref<64x512xf32, #tpu.memory_space<vmem>>) attributes {dimension_semantics = [#tpu.dimension_semantics<parallel>, #tpu.dimension_semantics<arbitrary>], iteration_bounds = array<i64: 1, 1>, scalar_prefetch = 0 : i64, scratch_operands = 1 : i64, tpu.core_type = #tpu.core_type<tc>, window_params = [{transform_indices = @transform_0, window_bounds = array<i64: 3, 512>}, {pipeline_mode = #tpu.pipeline_mode<synchronous>, transform_indices = @transform_1, window_bounds = array<i64: 64, 3>}, {pipeline_mode = #tpu.pipeline_mode<synchronous>, transform_indices = @transform_2, window_bounds = array<i64: 64, 1>}, {transform_indices = @transform_3, window_bounds = array<i64: 1, 64, 1>}]} {
    %c0_i32 = arith.constant 0 : i32
    %0 = arith.cmpi eq, %arg1, %c0_i32 : i32
    %1 = arith.extui %0 : i1 to i32
    %c0_i32_0 = arith.constant 0 : i32
    %2 = arith.cmpi ne, %1, %c0_i32_0 : i32
    scf.if %2 {
      %cst_12 = arith.constant 0.000000e+00 : f32
      %35 = vector.broadcast %cst_12 : f32 to vector<64x512xf32>
      %c0_13 = arith.constant 0 : index
      %c0_14 = arith.constant 0 : index
      %36 = vector.load %arg6[%c0_13, %c0_14] : memref<64x512xf32, #tpu.memory_space<vmem>>, vector<64x512xf32>
      tpu.vector_store %arg6[%c0_13, %c0_14], %35 {strides = array<i32>} : memref<64x512xf32, #tpu.memory_space<vmem>>, vector<64x512xf32>,
    } else {
    }
    %c0 = arith.constant 0 : index
    %c0_1 = arith.constant 0 : index
    %3 = vector.load %arg2[%c0, %c0_1] : memref<3x512xf32, #tpu.memory_space<vmem>>, vector<3x512xf32>
    %c0_2 = arith.constant 0 : index
    %c0_3 = arith.constant 0 : index
    %4 = vector.load %arg3[%c0_2, %c0_3] : memref<64x3xf32, #tpu.memory_space<vmem>>, vector<64x3xf32>
    %c0_4 = arith.constant 0 : index
    %c0_5 = arith.constant 0 : index
    %5 = vector.load %arg4[%c0_4, %c0_5] : memref<64x1xf32, #tpu.memory_space<vmem>>, vector<64x1xf32>
    %6 = vector.extract_strided_slice %4 {offsets = [0, 0], sizes = [64, 1], strides = [1, 1]} : vector<64x3xf32> to vector<64x1xf32>
    %7 = vector.extract_strided_slice %3 {offsets = [0, 0], sizes = [1, 512], strides = [1, 1]} : vector<3x512xf32> to vector<1x512xf32>
    %8 = vector.broadcast %6 : vector<64x1xf32> to vector<64x512xf32>
    %9 = vector.broadcast %7 : vector<1x512xf32> to vector<64x512xf32>
    %10 = arith.mulf %8, %9 : vector<64x512xf32>
    %11 = vector.broadcast %5 : vector<64x1xf32> to vector<64x512xf32>
    %12 = arith.addf %11, %10 : vector<64x512xf32>
    %13 = vector.extract_strided_slice %4 {offsets = [0, 1], sizes = [64, 1], strides = [1, 1]} : vector<64x3xf32> to vector<64x1xf32>
    %14 = vector.extract_strided_slice %3 {offsets = [1, 0], sizes = [1, 512], strides = [1, 1]} : vector<3x512xf32> to vector<1x512xf32>
    %15 = vector.broadcast %13 : vector<64x1xf32> to vector<64x512xf32>
    %16 = vector.broadcast %14 : vector<1x512xf32> to vector<64x512xf32>
    %17 = arith.mulf %15, %16 : vector<64x512xf32>
    %18 = arith.addf %12, %17 : vector<64x512xf32>
    %19 = vector.extract_strided_slice %4 {offsets = [0, 2], sizes = [64, 1], strides = [1, 1]} : vector<64x3xf32> to vector<64x1xf32>
    %20 = vector.extract_strided_slice %3 {offsets = [2, 0], sizes = [1, 512], strides = [1, 1]} : vector<3x512xf32> to vector<1x512xf32>
    %21 = vector.broadcast %19 : vector<64x1xf32> to vector<64x512xf32>
    %22 = vector.broadcast %20 : vector<1x512xf32> to vector<64x512xf32>
    %23 = arith.mulf %21, %22 : vector<64x512xf32>
    %24 = arith.addf %18, %23 : vector<64x512xf32>
    %cst = arith.constant 9.99999997E-7 : f32
    %25 = vector.broadcast %cst : f32 to vector<64x512xf32>
    %26 = arith.maximumf %24, %25 : vector<64x512xf32>
    %c0_6 = arith.constant 0 : index
    %c0_7 = arith.constant 0 : index
    %27 = vector.load %arg6[%c0_6, %c0_7] : memref<64x512xf32, #tpu.memory_space<vmem>>, vector<64x512xf32>
    %28 = arith.mulf %26, %26 : vector<64x512xf32>
    %29 = arith.mulf %28, %26 : vector<64x512xf32>
    %30 = arith.addf %27, %29 : vector<64x512xf32>
    %c0_8 = arith.constant 0 : index
    %c0_9 = arith.constant 0 : index
    %31 = vector.load %arg6[%c0_8, %c0_9] : memref<64x512xf32, #tpu.memory_space<vmem>>, vector<64x512xf32>
    tpu.vector_store %arg6[%c0_8, %c0_9], %30 {strides = array<i32>} : memref<64x512xf32, #tpu.memory_space<vmem>>, vector<64x512xf32>,
    %c0_i32_10 = arith.constant 0 : i32
    %32 = arith.cmpi eq, %arg1, %c0_i32_10 : i32
    %33 = arith.extui %32 : i1 to i32
    %c0_i32_11 = arith.constant 0 : i32
    %34 = arith.cmpi ne, %33, %c0_i32_11 : i32
    scf.if %34 {
      %c0_12 = arith.constant 0 : index
      %c0_13 = arith.constant 0 : index
      %35 = vector.load %arg6[%c0_12, %c0_13] : memref<64x512xf32, #tpu.memory_space<vmem>>, vector<64x512xf32>
      %cst_14 = arith.constant dense<0.000000e+00> : vector<64xf32>
      %36 = vector.multi_reduction <add>, %35, %cst_14 [1] : vector<64x512xf32> to vector<64xf32>
      %37 = vector.shape_cast %36 : vector<64xf32> to vector<64x1xf32>
      %c0_15 = arith.constant 0 : index
      %c0_16 = arith.constant 0 : index
      %c0_17 = arith.constant 0 : index
      %38 = vector.load %arg5[%c0_15, %c0_16, %c0_17] : memref<1x64x1xf32, #tpu.memory_space<vmem>>, vector<1x64x1xf32>
      %39 = vector.shape_cast %38 : vector<1x64x1xf32> to vector<64x1xf32>
      %40 = vector.shape_cast %37 : vector<64x1xf32> to vector<1x64x1xf32>
      tpu.vector_store %arg5[%c0_15, %c0_16, %c0_17], %40 {strides = array<i32>} : memref<1x64x1xf32, #tpu.memory_space<vmem>>, vector<1x64x1xf32>,
    } else {
    }
    return
  }
  func.func @transform_0(%arg0: i32, %arg1: i32) -> (i32, i32) {
    %c1_i32 = arith.constant 1 : i32
    %0 = arith.muli %arg0, %c1_i32 : i32
    %1 = arith.addi %0, %arg1 : i32
    %c0_i32 = arith.constant 0 : i32
    %c0_i32_0 = arith.constant 0 : i32
    return %c0_i32, %1 : i32, i32
  }
  func.func @transform_1(%arg0: i32, %arg1: i32) -> (i32, i32) {
    %c0_i32 = arith.constant 0 : i32
    %c0_i32_0 = arith.constant 0 : i32
    %c0_i32_1 = arith.constant 0 : i32
    return %c0_i32, %c0_i32_0 : i32, i32
  }
  func.func @transform_2(%arg0: i32, %arg1: i32) -> (i32, i32) {
    %c0_i32 = arith.constant 0 : i32
    %c0_i32_0 = arith.constant 0 : i32
    %c0_i32_1 = arith.constant 0 : i32
    return %c0_i32, %c0_i32_0 : i32, i32
  }
  func.func @transform_3(%arg0: i32, %arg1: i32) -> (i32, i32, i32) {
    %c0_i32 = arith.constant 0 : i32
    %c0_i32_0 = arith.constant 0 : i32
    %c0_i32_1 = arith.constant 0 : i32
    return %arg0, %c0_i32, %c0_i32_0 : i32, i32, i32
  }
}

</mosaic_0001>

<bundles_post_ra>
// kernel: net_embedding.1
= control target key start
LH: loop header
LB: loop body
LE: loop exit
PB: predicated region body
PF: predicated region fallthrough
CT: control target
= control target key end

     0   :  { %v831_v0 = vmov 0   ;;  %v832_v17 = vmov 1   ;;  %v833_v18 = vmov 2   ;;  %v132_v19 = vlaneseq  ;;  %s1249_s1 = inlined_call_operand.vmem [shape: f32[64,3], index: 1, kind: input, shape index: {}]   ;;  %s1250_s2 = inlined_call_operand.vmem [shape: f32[64,1], index: 2, kind: input, shape index: {}]   ;;  %s1251_s0 = inlined_call_operand.vmem [shape: f32[3,512], index: 0, kind: input, shape index: {}]   ;;  %s1252_s3 = inlined_call_operand.vmem [shape: f32[1,64,1], index: 3, kind: output, shape index: {}]  }
   0x1   :  { %826 = vset.pattern.permute.xlu1 %v831_v0  ;;  %825 = vset.pattern.permute.xlu0 %v831_v0  ;;  %v76_v1 = vld [vmem:[%s1249_s1 + $0x10] sm:$0xff]  ;;  %v74_v2 = vld [vmem:[%s1249_s1] sm:$0xff]  ;;  %v77_v3 = vld [vmem:[%s1249_s1 + $0x18] sm:$0xff]  ;;  %vm803_vm0 = vcmask 7168  }
   0x2   :  { %102 = vperm.xlu1 %826, %v76_v1   ;;  %92 = vperm.xlu0 %825, %v74_v2   ;;  %v75_v4 = vld [vmem:[%s1249_s1 + $0x8] sm:$0xff]  ;;  %v78_v6 = vld [vmem:[%s1249_s1 + $0x20] sm:$0xff]  ;;  %v81_v7 = vld [vmem:[%s1249_s1 + $0x38] sm:$0xff]  ;;  %v133_v22 = vshrl.u32 %v132_v19, 7 }
   0x3   :  { %v79_v5 = vld [vmem:[%s1249_s1 + $0x28] sm:$0xff]  ;;  %v80_v8 = vld [vmem:[%s1249_s1 + $0x30] sm:$0xff]  ;;  %v82_v10 = vld [vmem:[%s1250_s2] sm:$0xff] }
   0x4   :  { %v83_v9 = vld [vmem:[%s1250_s2 + $0x8] sm:$0xff]  ;;  %v85_v11 = vld [vmem:[%s1250_s2 + $0x18] sm:$0xff]  ;;  %v84_v12 = vld [vmem:[%s1250_s2 + $0x10] sm:$0xff]  ;;  %v134_v25 = vsub.s32 0, %v133_v22  ;;  %v138_v26 = vsub.s32 4, %v133_v22  ;;  %v306_v31 = vsub.s32 1, %v133_v22 }
   0x5   :  { %v87_v13 = vld [vmem:[%s1250_s2 + $0x28] sm:$0xff]  ;;  %v86_v14 = vld [vmem:[%s1250_s2 + $0x20] sm:$0xff]  ;;  %v89_v15 = vld [vmem:[%s1250_s2 + $0x38] sm:$0xff]  ;;  %v310_v32 = vsub.s32 5, %v133_v22  ;;  %v438_v33 = vsub.s32 2, %v133_v22  ;;  %v442_v34 = vsub.s32 6, %v133_v22 }
   0x6   :  { %107 = vperm.xlu1 %826, %v77_v3   ;;  %97 = vperm.xlu0 %825, %v75_v4   ;;  %v88_v16 = vld [vmem:[%s1250_s2 + $0x30] sm:$0xff]  ;;  %v72_v27 = vld [vmem:[%s1251_s0] sm:$0x77]  ;;  %v73_v28 = vld [vmem:[%s1251_s0 + $0x8] sm:$0x77] }
   0x7   :  { %v135_v35 = vrot.slane %v72_v27, %v134_v25  ;;  %v139_v36 = vrot.slane %v72_v27, %v138_v26  ;;  %v143_v37 = vrot.slane %v73_v28, %v134_v25  ;;  %v147_v38 = vrot.slane %v73_v28, %v138_v26 }
   0x8   :  { %v307_v41 = vrot.slane %v72_v27, %v306_v31  ;;  %v311_v42 = vrot.slane %v72_v27, %v310_v32  ;;  %v315_v43 = vrot.slane %v73_v28, %v306_v31  ;;  %v319_v44 = vrot.slane %v73_v28, %v310_v32 }
   0x9   :  { %v439_v45 = vrot.slane %v72_v27, %v438_v33  ;;  %v443_v46 = vrot.slane %v72_v27, %v442_v34  ;;  %v447_v47 = vrot.slane %v73_v28, %v438_v33  ;;  %v155_v48 = vrot.slane %v135_v35, %v134_v25 }
   0xa   :  { %117 = vperm.xlu1 %826, %v79_v5   ;;  %112 = vperm.xlu0 %825, %v78_v6   ;;  %v159_v49 = vrot.slane %v139_v36, %v134_v25  ;;  %v163_v50 = vrot.slane %v143_v37, %v134_v25  ;;  %v451_v51 = vrot.slane %v73_v28, %v442_v34 }
   0xb   :  { %v167_v52 = vrot.slane %v147_v38, %v134_v25  ;;  %v908_v55 = vrot.slane %v307_v41, %v306_v31  ;;  %v910_v56 = vrot.slane %v311_v42, %v306_v31  ;;  %v912_v57 = vrot.slane %v315_v43, %v306_v31 }
   0xc   :  { %v914_v58 = vrot.slane %v319_v44, %v306_v31  ;;  %v916_v59 = vrot.slane %v439_v45, %v438_v33  ;;  %v918_v60 = vrot.slane %v443_v46, %v438_v33  ;;  %v920_v61 = vrot.slane %v447_v47, %v438_v33 }
   0xe   :  { %127 = vperm.xlu1 %826, %v81_v7   ;;  %122 = vperm.xlu0 %825, %v80_v8   ;;  %1255 = vst [vmem:[#allocation3_spill] sm:$0xff] %v920_v61 }
  0x12   :  { %207 = vperm.xlu1 %826, %v83_v9   ;;  %202 = vperm.xlu0 %825, %v82_v10  }
  0x16   :  { %217 = vperm.xlu1 %826, %v85_v11   ;;  %212 = vperm.xlu0 %825, %v84_v12  }
  0x1a   :  { %227 = vperm.xlu1 %826, %v87_v13   ;;  %222 = vperm.xlu0 %825, %v86_v14  }
  0x1e   :  { %237 = vperm.xlu1 %826, %v89_v15   ;;  %232 = vperm.xlu0 %825, %v88_v16  }
  0x22   :  { %828 = vset.pattern.permute.xlu1 %v832_v17  ;;  %827 = vset.pattern.permute.xlu0 %v832_v17 }
  0x23   :  { %277 = vperm.xlu1 %828, %v75_v4   ;;  %273 = vperm.xlu0 %827, %v74_v2  }
  0x27   :  { %281 = vperm.xlu1 %828, %v76_v1   ;;  %285 = vperm.xlu0 %827, %v77_v3  }
  0x2b   :  { %289 = vperm.xlu1 %828, %v78_v6   ;;  %293 = vperm.xlu0 %827, %v79_v5  }
  0x2f   :  { %297 = vperm.xlu1 %828, %v80_v8   ;;  %301 = vperm.xlu0 %827, %v81_v7  }
  0x33   :  { %829 = vset.pattern.permute.xlu1 %v833_v18  ;;  %830 = vset.pattern.permute.xlu0 %v833_v18 }
  0x34   :  { %405 = vperm.xlu1 %829, %v74_v2   ;;  %409 = vperm.xlu0 %830, %v75_v4  }
  0x38   :  { %413 = vperm.xlu1 %829, %v76_v1   ;;  %421 = vperm.xlu0 %830, %v78_v6   ;;  %v922_v1 = vrot.slane %v451_v51, %v438_v33 }
  0x3a   :  { %1256 = vst [vmem:[#allocation4_spill] sm:$0xff] %v922_v1 }
  0x3c   :  { %417 = vperm.xlu1 %829, %v77_v3   ;;  %429 = vperm.xlu0 %830, %v80_v8  }
  0x40   :  { %425 = vperm.xlu1 %829, %v79_v5  }
  0x44   :  { %433 = vperm.xlu1 %829, %v81_v7  }
  0x7d   :  { %v103_v20 = vpop.permute.xlu1 %102  ;;  %v93_v21 = vpop.permute.xlu0 %92 }
  0x7e   :  { %v176_v62 = vmul.f32 %v155_v48, %v103_v20  ;;  %v177_v63 = vmul.f32 %v159_v49, %v103_v20  ;;  %v178_v0 = vmul.f32 %v163_v50, %v103_v20  ;;  %v179_v2 = vmul.f32 %v167_v52, %v103_v20 }
  0x7f   :  { %v168_v3 = vmul.f32 %v155_v48, %v93_v21  ;;  %v169_v4 = vmul.f32 %v159_v49, %v93_v21  ;;  %v170_v5 = vmul.f32 %v163_v50, %v93_v21  ;;  %v171_v8 = vmul.f32 %v167_v52, %v93_v21 }
  0x81   :  { %v108_v23 = vpop.permute.xlu1 %107  ;;  %v98_v24 = vpop.permute.xlu0 %97 }
  0x82   :  { %v180_v9 = vmul.f32 %v155_v48, %v108_v23  ;;  %v181_v10 = vmul.f32 %v159_v49, %v108_v23  ;;  %v182_v11 = vmul.f32 %v163_v50, %v108_v23  ;;  %v183_v12 = vmul.f32 %v167_v52, %v108_v23 }
  0x83   :  { %v172_v13 = vmul.f32 %v155_v48, %v98_v24  ;;  %v173_v14 = vmul.f32 %v159_v49, %v98_v24  ;;  %v174_v15 = vmul.f32 %v163_v50, %v98_v24  ;;  %v175_v16 = vmul.f32 %v167_v52, %v98_v24 }
  0x85   :  { %v118_v29 = vpop.permute.xlu1 %117  ;;  %v113_v30 = vpop.permute.xlu0 %112 }
  0x86   :  { %v188_v17 = vmul.f32 %v155_v48, %v118_v29  ;;  %v189_v18 = vmul.f32 %v159_v49, %v118_v29  ;;  %v190_v19 = vmul.f32 %v163_v50, %v118_v29  ;;  %v191_v22 = vmul.f32 %v167_v52, %v118_v29 }
  0x87   :  { %v184_v25 = vmul.f32 %v155_v48, %v113_v30  ;;  %v185_v20 = vmul.f32 %v159_v49, %v113_v30  ;;  %v186_v26 = vmul.f32 %v163_v50, %v113_v30  ;;  %v187_v31 = vmul.f32 %v167_v52, %v113_v30 }
  0x89   :  { %v128_v39 = vpop.permute.xlu1 %127  ;;  %v123_v40 = vpop.permute.xlu0 %122 }
  0x8a   :  { %v196_v32 = vmul.f32 %v155_v48, %v128_v39  ;;  %v197_v21 = vmul.f32 %v159_v49, %v128_v39  ;;  %v198_v33 = vmul.f32 %v163_v50, %v128_v39  ;;  %v199_v34 = vmul.f32 %v167_v52, %v128_v39 }
  0x8b   :  { %v192_v35 = vmul.f32 %v155_v48, %v123_v40  ;;  %v193_v23 = vmul.f32 %v159_v49, %v123_v40  ;;  %v194_v36 = vmul.f32 %v163_v50, %v123_v40  ;;  %v195_v37 = vmul.f32 %v167_v52, %v123_v40 }
  0x8d   :  { %v208_v53 = vpop.permute.xlu1 %207  ;;  %v203_v54 = vpop.permute.xlu0 %202 }
  0x8e   :  { %v244_v38 = vadd.f32 %v208_v53, %v172_v13  ;;  %v245_v24 = vadd.f32 %v208_v53, %v173_v14  ;;  %v246_v41 = vadd.f32 %v208_v53, %v174_v15  ;;  %v247_v42 = vadd.f32 %v208_v53, %v175_v16 }
  0x8f   :  { %v240_v43 = vadd.f32 %v203_v54, %v168_v3  ;;  %v241_v29 = vadd.f32 %v203_v54, %v169_v4  ;;  %v242_v44 = vadd.f32 %v203_v54, %v170_v5  ;;  %v243_v47 = vadd.f32 %v203_v54, %v171_v8 }
  0x91   :  { %v218_v6 = vpop.permute.xlu1 %217  ;;  %v213_v7 = vpop.permute.xlu0 %212 }
  0x92   :  { %v252_v51 = vadd.f32 %v218_v6, %v180_v9  ;;  %v253_v30 = vadd.f32 %v218_v6, %v181_v10  ;;  %v254_v1 = vadd.f32 %v218_v6, %v182_v11  ;;  %v924_v61 = vadd.f32 %v218_v6, %v183_v12 }
  0x93   :  { %v248_v39 = vadd.f32 %v213_v7, %v176_v62  ;;  %v249_v48 = vadd.f32 %v213_v7, %v177_v63  ;;  %v250_v49 = vadd.f32 %v213_v7, %v178_v0  ;;  %v251_v50 = vadd.f32 %v213_v7, %v179_v2 }
  0x95   :  { %v228_v27 = vpop.permute.xlu1 %227  ;;  %v223_v28 = vpop.permute.xlu0 %222 }
  0x96   :  { %v926_v40 = vadd.f32 %v228_v27, %v188_v17  ;;  %v928_v52 = vadd.f32 %v228_v27, %v189_v18  ;;  %v930_v53 = vadd.f32 %v228_v27, %v190_v19  ;;  %v932_v3 = vadd.f32 %v228_v27, %v191_v22 }
  0x97   :  { %v256_v4 = vadd.f32 %v223_v28, %v184_v25  ;;  %v257_v5 = vadd.f32 %v223_v28, %v185_v20  ;;  %v258_v54 = vadd.f32 %v223_v28, %v186_v26  ;;  %v934_v8 = vadd.f32 %v223_v28, %v187_v31 }
  0x99   :  { %v238_v45 = vpop.permute.xlu1 %237  ;;  %v233_v46 = vpop.permute.xlu0 %232 }
  0x9a   :  { %v936_v9 = vadd.f32 %v238_v45, %v196_v32  ;;  %v938_v6 = vadd.f32 %v238_v45, %v197_v21  ;;  %v940_v62 = vadd.f32 %v238_v45, %v198_v33  ;;  %v942_v2 = vadd.f32 %v238_v45, %v199_v34 }
  0x9b   :  { %v264_v12 = vadd.f32 %v233_v46, %v192_v35  ;;  %v265_v13 = vadd.f32 %v233_v46, %v193_v23  ;;  %v266_v14 = vadd.f32 %v233_v46, %v194_v36  ;;  %v267_v22 = vadd.f32 %v233_v46, %v195_v37 }
  0x9e   :  { %v278_v63 = vpop.permute.xlu1 %277  ;;  %v274_v0 = vpop.permute.xlu0 %273 }
  0x9f   :  { %v344_v7 = vmul.f32 %v908_v55, %v278_v63  ;;  %v345_v10 = vmul.f32 %v910_v56, %v278_v63  ;;  %v346_v11 = vmul.f32 %v912_v57, %v278_v63  ;;  %v347_v15 = vmul.f32 %v914_v58, %v278_v63 }
  0xa0   :  { %v340_v16 = vmul.f32 %v908_v55, %v274_v0  ;;  %v341_v17 = vmul.f32 %v910_v56, %v274_v0  ;;  %v342_v18 = vmul.f32 %v912_v57, %v274_v0  ;;  %v343_v19 = vmul.f32 %v914_v58, %v274_v0 }
  0xa1   :  { %v952_v25 = vadd.f32 %v344_v7, %v244_v38  ;;  %v954_v20 = vadd.f32 %v345_v10, %v245_v24  ;;  %v956_v26 = vadd.f32 %v346_v11, %v246_v41  ;;  %v962_v34 = vadd.f32 %v347_v15, %v247_v42 }
  0xa2   :  { %v282_v27 = vpop.permute.xlu1 %281  ;;  %v286_v28 = vpop.permute.xlu0 %285  ;;  %v372_v37 = vadd.f32 %v340_v16, %v240_v43  ;;  %v373_v38 = vadd.f32 %v341_v17, %v241_v29  ;;  %v374_v24 = vadd.f32 %v342_v18, %v242_v44  ;;  %v967_v41 = vadd.f32 %v343_v19, %v243_v47 }
  0xa3   :  { %v348_v31 = vmul.f32 %v908_v55, %v282_v27  ;;  %v349_v32 = vmul.f32 %v910_v56, %v282_v27  ;;  %v350_v21 = vmul.f32 %v912_v57, %v282_v27  ;;  %v351_v33 = vmul.f32 %v914_v58, %v282_v27 }
  0xa4   :  { %v352_v35 = vmul.f32 %v908_v55, %v286_v28  ;;  %v353_v23 = vmul.f32 %v910_v56, %v286_v28  ;;  %v354_v36 = vmul.f32 %v912_v57, %v286_v28  ;;  %v355_v42 = vmul.f32 %v914_v58, %v286_v28 }
  0xa5   :  { %v969_v45 = vadd.f32 %v348_v31, %v248_v39  ;;  %v971_v46 = vadd.f32 %v349_v32, %v249_v48  ;;  %v973_v63 = vadd.f32 %v350_v21, %v250_v49  ;;  %v976_v10 = vadd.f32 %v351_v33, %v251_v50 }
  0xa6   :  { %v290_v0 = vpop.permute.xlu1 %289  ;;  %v294_v7 = vpop.permute.xlu0 %293  ;;  %v981_v44 = vadd.f32 %v352_v35, %v252_v51  ;;  %v983_v47 = vadd.f32 %v353_v23, %v253_v30  ;;  %v985_v39 = vadd.f32 %v354_v36, %v254_v1  ;;  %v993_v17 = vadd.f32 %v355_v42, %v924_v61  ;;  %v1257_v42 = vld [vmem:[#allocation3_spill] sm:$0xff] }
  0xa7   :  { %v356_v11 = vmul.f32 %v908_v55, %v290_v0  ;;  %v357_v43 = vmul.f32 %v910_v56, %v290_v0  ;;  %v358_v29 = vmul.f32 %v912_v57, %v290_v0  ;;  %v359_v48 = vmul.f32 %v914_v58, %v290_v0 }
  0xa8   :  { %v360_v49 = vmul.f32 %v908_v55, %v294_v7  ;;  %v361_v15 = vmul.f32 %v910_v56, %v294_v7  ;;  %v362_v50 = vmul.f32 %v912_v57, %v294_v7  ;;  %v363_v16 = vmul.f32 %v914_v58, %v294_v7 }
  0xa9   :  { %v995_v18 = vadd.f32 %v356_v11, %v256_v4  ;;  %v997_v51 = vadd.f32 %v357_v43, %v257_v5  ;;  %v999_v30 = vadd.f32 %v358_v29, %v258_v54  ;;  %v1006_v21 = vadd.f32 %v359_v48, %v934_v8 }
  0xaa   :  { %v298_v1 = vpop.permute.xlu1 %297  ;;  %v302_v19 = vpop.permute.xlu0 %301  ;;  %v1012_v54 = vadd.f32 %v360_v49, %v926_v40  ;;  %v1015_v33 = vadd.f32 %v361_v15, %v928_v52  ;;  %v1018_v35 = vadd.f32 %v362_v50, %v930_v53  ;;  %v1021_v23 = vadd.f32 %v363_v16, %v932_v3 }
  0xab   :  { %v364_v27 = vmul.f32 %v908_v55, %v298_v1  ;;  %v365_v28 = vmul.f32 %v910_v56, %v298_v1  ;;  %v366_v31 = vmul.f32 %v912_v57, %v298_v1  ;;  %v367_v32 = vmul.f32 %v914_v58, %v298_v1 }
  0xac   :  { %v368_v61 = vmul.f32 %v908_v55, %v302_v19  ;;  %v369_v4 = vmul.f32 %v910_v56, %v302_v19  ;;  %v370_v5 = vmul.f32 %v912_v57, %v302_v19  ;;  %v371_v56 = vmul.f32 %v914_v58, %v302_v19  ;;  %v1258_v58 = vld [vmem:[#allocation4_spill] sm:$0xff] }
  0xad   :  { %v1023_v8 = vadd.f32 %v364_v27, %v264_v12  ;;  %v1025_v36 = vadd.f32 %v365_v28, %v265_v13  ;;  %v1027_v55 = vadd.f32 %v366_v31, %v266_v14  ;;  %v1030_v57 = vadd.f32 %v367_v32, %v267_v22 }
  0xae   :  { %v1033_v40 = vadd.f32 %v368_v61, %v936_v9  ;;  %v1036_v52 = vadd.f32 %v369_v4, %v938_v6  ;;  %v1039_v53 = vadd.f32 %v370_v5, %v940_v62  ;;  %v1050_v62 = vadd.f32 %v371_v56, %v942_v2 }
  0xaf   :  { %v406_v3 = vpop.permute.xlu1 %405  ;;  %v410_v12 = vpop.permute.xlu0 %409 }
  0xb0   :  { %v472_v13 = vmul.f32 %v916_v59, %v406_v3  ;;  %v473_v14 = vmul.f32 %v918_v60, %v406_v3  ;;  %v474_v0 = vmul.f32 %v1257_v42, %v406_v3  ;;  %v475_v22 = vmul.f32 %v1258_v58, %v406_v3 }
  0xb1   :  { %v476_v7 = vmul.f32 %v916_v59, %v410_v12  ;;  %v477_v9 = vmul.f32 %v918_v60, %v410_v12  ;;  %v478_v6 = vmul.f32 %v1257_v42, %v410_v12  ;;  %v479_v11 = vmul.f32 %v1258_v58, %v410_v12 }
  0xb2   :  { %v504_v43 = vadd.f32 %v472_v13, %v372_v37  ;;  %v505_v29 = vadd.f32 %v473_v14, %v373_v38  ;;  %v1052_v48 = vadd.f32 %v474_v0, %v374_v24  ;;  %v1058_v19 = vadd.f32 %v475_v22, %v967_v41 }
  0xb3   :  { %v508_v49 = vadd.f32 %v476_v7, %v952_v25  ;;  %v509_v15 = vadd.f32 %v477_v9, %v954_v20  ;;  %v510_v50 = vadd.f32 %v478_v6, %v956_v26  ;;  %v414_v16 = vpop.permute.xlu1 %413  ;;  %v422_v1 = vpop.permute.xlu0 %421  ;;  %v511_v38 = vadd.f32 %v479_v11, %v962_v34 }
  0xb4   :  { %v1060_v27 = vmax.f32 %v504_v43, 1e-06  ;;  %v480_v2 = vmul.f32 %v916_v59, %v414_v16  ;;  %v481_v37 = vmul.f32 %v918_v60, %v414_v16  ;;  %v1065_v24 = vmax.f32 %v505_v29, 1e-06 }
  0xb5   :  { %v540_v25 = vmax.f32 %v508_v49, 1e-06  ;;  %v1067_v28 = vmax.f32 %v509_v15, 1e-06  ;;  %v482_v20 = vmul.f32 %v1257_v42, %v414_v16  ;;  %v488_v31 = vmul.f32 %v916_v59, %v422_v1 }
  0xb6   :  { %v512_v26 = vadd.f32 %v480_v2, %v969_v45  ;;  %v513_v41 = vadd.f32 %v481_v37, %v971_v46  ;;  %v489_v32 = vmul.f32 %v918_v60, %v422_v1  ;;  %v1075_v61 = vmul.f32 %v1258_v58, %v414_v16 }
  0xb7   :  { %v1078_v34 = vadd.f32 %v482_v20, %v973_v63  ;;  %v490_v4 = vmul.f32 %v1257_v42, %v422_v1  ;;  %v1082_v5 = vmul.f32 %v1258_v58, %v422_v1  ;;  %v418_v56 = vpop.permute.xlu1 %417  ;;  %v430_v3 = vpop.permute.xlu0 %429  ;;  %v520_v46 = vadd.f32 %v488_v31, %v995_v18 }
  0xb8   :  { %v1084_v45 = vmax.f32 %v512_v26, 1e-06  ;;  %v521_v12 = vadd.f32 %v489_v32, %v997_v51  ;;  %v542_v13 = vmax.f32 %v510_v50, 1e-06  ;;  %v1088_v14 = vmax.f32 %v513_v41, 1e-06 }
  0xb9   :  { %v484_v0 = vmul.f32 %v916_v59, %v418_v56  ;;  %v485_v63 = vmul.f32 %v918_v60, %v418_v56  ;;  %v486_v22 = vmul.f32 %v1257_v42, %v418_v56  ;;  %v522_v7 = vadd.f32 %v490_v4, %v999_v30 }
  0xba   :  { %v1094_v9 = vmax.f32 %v520_v46, 1e-06  ;;  %v1096_v6 = vmax.f32 %v521_v12, 1e-06  ;;  %v496_v11 = vmul.f32 %v916_v59, %v430_v3  ;;  %v1100_v18 = vmul.f32 %v1258_v58, %v418_v56 }
  0xbb   :  { %v516_v51 = vadd.f32 %v484_v0, %v981_v44  ;;  %v517_v43 = vadd.f32 %v485_v63, %v983_v47  ;;  %v497_v29 = vmul.f32 %v918_v60, %v430_v3  ;;  %v426_v49 = vpop.permute.xlu1 %425  ;;  %v1106_v15 = vadd.f32 %v486_v22, %v985_v39 }
  0xbc   :  { %v498_v30 = vmul.f32 %v1257_v42, %v430_v3  ;;  %v528_v50 = vadd.f32 %v496_v11, %v1023_v8  ;;  %v492_v16 = vmul.f32 %v916_v59, %v426_v49  ;;  %v1114_v2 = vmul.f32 %v1258_v58, %v430_v3 }
  0xbd   :  { %v1111_v1 = vmax.f32 %v516_v51, 1e-06  ;;  %v529_v44 = vadd.f32 %v497_v29, %v1025_v36  ;;  %v493_v47 = vmul.f32 %v918_v60, %v426_v49  ;;  %v1118_v37 = vmax.f32 %v517_v43, 1e-06 }
  0xbe   :  { %v1121_v39 = vadd.f32 %v498_v30, %v1027_v55  ;;  %v1123_v20 = vmax.f32 %v528_v50, 1e-06  ;;  %v494_v8 = vmul.f32 %v1257_v42, %v426_v49  ;;  %v1127_v26 = vmul.f32 %v1258_v58, %v426_v49 }
  0xbf   :  { %v524_v41 = vadd.f32 %v492_v16, %v1012_v54  ;;  %v525_v31 = vadd.f32 %v493_v47, %v1015_v33  ;;  %v434_v32 = vpop.permute.xlu1 %433  ;;  %v543_v36 = vmax.f32 %v511_v38, 1e-06  ;;  %v1131_v4 = vmax.f32 %v529_v44, 1e-06 }
  0xc0   :  { %v500_v56 = vmul.f32 %v916_v59, %v434_v32  ;;  %v501_v55 = vmul.f32 %v918_v60, %v434_v32  ;;  %v502_v3 = vmul.f32 %v1257_v42, %v434_v32  ;;  %v1137_v46 = vadd.f32 %v494_v8, %v1018_v35 }
  0xc1   :  { %v1139_v12 = vmax.f32 %v524_v41, 1e-06  ;;  %v1141_v0 = vmax.f32 %v525_v31, 1e-06  ;;  %v604_v54 = vmul.f32 %v540_v25, %v540_v25  ;;  %v1144_v33 = vmul.f32 %v1258_v58, %v434_v32 }
  0xc2   :  { %v532_v38 = vadd.f32 %v500_v56, %v1033_v40  ;;  %v1148_v63 = vadd.f32 %v501_v55, %v1036_v52  ;;  %v605_v59 = vmul.f32 %v1067_v28, %v1067_v28  ;;  %v606_v60 = vmul.f32 %v542_v13, %v542_v13 }
  0xc3   :  { %v607_v42 = vmul.f32 %v543_v36, %v543_v36  ;;  %v636_v35 = vmul.f32 %v604_v54, %v540_v25  ;;  %v538_v22 = vmax.f32 %v1052_v48, 1e-06  ;;  %v1154_v11 = vadd.f32 %v502_v3, %v1039_v53 }
  0xc4   :  { %v1156_v51 = vmax.f32 %v532_v38, 1e-06  ;;  %v637_v58 = vmul.f32 %v605_v59, %v1067_v28  ;;  %v539_v40 = vmax.f32 %v1058_v19, 1e-06  ;;  %v638_v43 = vmul.f32 %v606_v60, %v542_v13 }
  0xc5   :  { %v639_v52 = vmul.f32 %v607_v42, %v543_v36  ;;  %v600_v29 = vmul.f32 %v1060_v27, %v1060_v27  ;;  %v601_v49 = vmul.f32 %v1065_v24, %v1065_v24  ;;  %v602_v30 = vmul.f32 %v538_v22, %v538_v22 }
  0xc6   :  { %v768_v25 = vadd.f32 %v637_v58, %v636_v35  ;;  %v603_v48 = vmul.f32 %v539_v40, %v539_v40  ;;  %v523_v53 = vadd.f32 %v1082_v5, %v1006_v21  ;;  %v554_v16 = vmax.f32 %v522_v7, 1e-06 }
  0xc7   :  { %v632_v50 = vmul.f32 %v600_v29, %v1060_v27  ;;  %v633_v28 = vmul.f32 %v601_v49, %v1065_v24  ;;  %v616_v19 = vmul.f32 %v1094_v9, %v1094_v9  ;;  %v634_v44 = vmul.f32 %v602_v30, %v538_v22 }
  0xc8   :  { %v769_v13 = vadd.f32 %v768_v25, %v638_v43  ;;  %v635_v47 = vmul.f32 %v603_v48, %v539_v40  ;;  %v555_v8 = vmax.f32 %v523_v53, 1e-06  ;;  %v617_v31 = vmul.f32 %v1096_v6, %v1096_v6 }
  0xc9   :  { %v763_v41 = vadd.f32 %v633_v28, %v632_v50  ;;  %v618_v32 = vmul.f32 %v554_v16, %v554_v16  ;;  %v648_v36 = vmul.f32 %v616_v19, %v1094_v9  ;;  %v515_v27 = vadd.f32 %v1075_v61, %v976_v10 }
  0xca   :  { %v770_v21 = vadd.f32 %v769_v13, %v639_v52  ;;  %v619_v5 = vmul.f32 %v555_v8, %v555_v8  ;;  %v546_v24 = vmax.f32 %v1078_v34, 1e-06  ;;  %v649_v56 = vmul.f32 %v617_v31, %v1096_v6 }
  0xcb   :  { %v764_v7 = vadd.f32 %v763_v41, %v634_v44  ;;  %v650_v55 = vmul.f32 %v618_v32, %v554_v16  ;;  %v608_v3 = vmul.f32 %v1084_v45, %v1084_v45  ;;  %v547_v38 = vmax.f32 %v515_v27, 1e-06 }
  0xcc   :  { %771 = vadd.xlane.f32.xlu1 %v770_v21  ;;  %v651_v54 = vmul.f32 %v619_v5, %v555_v8  ;;  %v609_v9 = vmul.f32 %v1088_v14, %v1088_v14  ;;  %v610_v59 = vmul.f32 %v546_v24, %v546_v24  ;;  %v783_v42 = vadd.f32 %v649_v56, %v648_v36 }
  0xcd   :  { %v765_v60 = vadd.f32 %v764_v7, %v635_v47  ;;  %v640_v10 = vmul.f32 %v608_v3, %v1084_v45  ;;  %v531_v61 = vadd.f32 %v1114_v2, %v1030_v57  ;;  %v611_v34 = vmul.f32 %v547_v38, %v547_v38 }
  0xce   :  { %v641_v6 = vmul.f32 %v609_v9, %v1088_v14  ;;  %v642_v35 = vmul.f32 %v610_v59, %v546_v24  ;;  %v562_v22 = vmax.f32 %v1121_v39, 1e-06  ;;  %v784_v58 = vadd.f32 %v783_v42, %v650_v55 }
  0xcf   :  { %766 = vadd.xlane.f32.xlu0 %v765_v60  ;;  %v563_v40 = vmax.f32 %v531_v61, 1e-06  ;;  %v624_v43 = vmul.f32 %v1123_v20, %v1123_v20  ;;  %v625_v52 = vmul.f32 %v1131_v4, %v1131_v4  ;;  %v643_v29 = vmul.f32 %v611_v34, %v547_v38 }
  0xd0   :  { %v773_v45 = vadd.f32 %v641_v6, %v640_v10  ;;  %v626_v49 = vmul.f32 %v562_v22, %v562_v22  ;;  %v519_v57 = vadd.f32 %v1100_v18, %v993_v17  ;;  %v785_v2 = vadd.f32 %v784_v58, %v651_v54 }
  0xd1   :  { %v627_v14 = vmul.f32 %v563_v40, %v563_v40  ;;  %v656_v25 = vmul.f32 %v624_v43, %v1123_v20  ;;  %v657_v39 = vmul.f32 %v625_v52, %v1131_v4  ;;  %v550_v53 = vmax.f32 %v1106_v15, 1e-06 }
  0xd2   :  { %v774_v30 = vadd.f32 %v773_v45, %v642_v35  ;;  %v658_v48 = vmul.f32 %v626_v49, %v562_v22  ;;  %v551_v50 = vmax.f32 %v519_v57, 1e-06  ;;  %786 = vadd.xlane.f32.xlu1 %v785_v2  ;;  %v612_v19 = vmul.f32 %v1111_v1, %v1111_v1 }
  0xd3   :  { %v659_v28 = vmul.f32 %v627_v14, %v563_v40  ;;  %v793_v16 = vadd.f32 %v657_v39, %v656_v25  ;;  %v613_v17 = vmul.f32 %v1118_v37, %v1118_v37  ;;  %v614_v13 = vmul.f32 %v550_v53, %v550_v53 }
  0xd4   :  { %v775_v18 = vadd.f32 %v774_v30, %v643_v29  ;;  %v615_v44 = vmul.f32 %v551_v50, %v551_v50  ;;  %v527_v20 = vadd.f32 %v1127_v26, %v1021_v23  ;;  %v644_v47 = vmul.f32 %v612_v19, %v1111_v1 }
  0xd5   :  { %v794_v4 = vadd.f32 %v793_v16, %v658_v48  ;;  %v645_v15 = vmul.f32 %v613_v17, %v1118_v37  ;;  %v558_v8 = vmax.f32 %v1137_v46, 1e-06  ;;  %v565_v41 = vmax.f32 %v1148_v63, 1e-06 }
  0xd6   :  { %776 = vadd.xlane.f32.xlu0 %v775_v18  ;;  %v646_v31 = vmul.f32 %v614_v13, %v550_v53  ;;  %v559_v32 = vmax.f32 %v527_v20, 1e-06  ;;  %v620_v36 = vmul.f32 %v1139_v12, %v1139_v12  ;;  %v621_v23 = vmul.f32 %v1141_v0, %v1141_v0 }
  0xd7   :  { %v795_v21 = vadd.f32 %v794_v4, %v659_v28  ;;  %v778_v5 = vadd.f32 %v645_v15, %v644_v47  ;;  %v622_v26 = vmul.f32 %v558_v8, %v558_v8  ;;  %v647_v27 = vmul.f32 %v615_v44, %v551_v50 }
  0xd8   :  { %v652_v1 = vmul.f32 %v620_v36, %v1139_v12  ;;  %v535_v37 = vadd.f32 %v1144_v33, %v1050_v62  ;;  %v566_v46 = vmax.f32 %v1154_v11, 1e-06  ;;  %v623_v24 = vmul.f32 %v559_v32, %v559_v32 }
  0xd9   :  { %796 = vadd.xlane.f32.xlu1 %v795_v21  ;;  %v779_v63 = vadd.f32 %v778_v5, %v646_v31  ;;  %v653_v7 = vmul.f32 %v621_v23, %v1141_v0  ;;  %v628_v56 = vmul.f32 %v1156_v51, %v1156_v51  ;;  %v629_v3 = vmul.f32 %v565_v41, %v565_v41 }
  0xda   :  { %v567_v55 = vmax.f32 %v535_v37, 1e-06  ;;  %v630_v54 = vmul.f32 %v566_v46, %v566_v46  ;;  %v654_v9 = vmul.f32 %v622_v26, %v558_v8  ;;  %v655_v33 = vmul.f32 %v623_v24, %v559_v32 }
  0xdb   :  { %v780_v38 = vadd.f32 %v779_v63, %v647_v27  ;;  %v788_v59 = vadd.f32 %v653_v7, %v652_v1  ;;  %v660_v12 = vmul.f32 %v628_v56, %v1156_v51  ;;  %v661_v62 = vmul.f32 %v629_v3, %v565_v41 }
  0xdc   :  { %v631_v60 = vmul.f32 %v567_v55, %v567_v55  ;;  %v662_v42 = vmul.f32 %v630_v54, %v566_v46 }
  0xdd   :  { %781 = vadd.xlane.f32.xlu0 %v780_v38  ;;  %v789_v11 = vadd.f32 %v788_v59, %v654_v9  ;;  %v798_v10 = vadd.f32 %v661_v62, %v660_v12 }
  0xde   :  { %v663_v0 = vmul.f32 %v631_v60, %v567_v55 }
  0xdf   :  { %v790_v61 = vadd.f32 %v789_v11, %v655_v33  ;;  %v799_v34 = vadd.f32 %v798_v10, %v662_v42 }
  0xe1   :  { %791 = vadd.xlane.f32.xlu0 %v790_v61  ;;  %v800_v6 = vadd.f32 %v799_v34, %v663_v0 }
  0xe5   :  { %801 = vadd.xlane.f32.xlu0 %v800_v6 }
 0x155   :  { %v772_v35 = vpop.xlane.xlu1 %771 }
 0x156   :  { %805 = vst.msk [vmem:[%s1252_s3 + $0x8] sm:$0xff] %vm803_vm0, %v772_v35 }
 0x158   :  { %v767_v51 = vpop.xlane.xlu0 %766 }
 0x159   :  { %804 = vst.msk [vmem:[%s1252_s3] sm:$0xff] %vm803_vm0, %v767_v51 }
 0x15b   :  { %v787_v22 = vpop.xlane.xlu1 %786 }
 0x15c   :  { %808 = vst.msk [vmem:[%s1252_s3 + $0x20] sm:$0xff] %vm803_vm0, %v787_v22 }
 0x15f   :  { %v777_v58 = vpop.xlane.xlu0 %776 }
 0x160   :  { %806 = vst.msk [vmem:[%s1252_s3 + $0x10] sm:$0xff] %vm803_vm0, %v777_v58 }
 0x162   :  { %v797_v40 = vpop.xlane.xlu1 %796 }
 0x163   :  { %810 = vst.msk [vmem:[%s1252_s3 + $0x30] sm:$0xff] %vm803_vm0, %v797_v40 }
 0x166   :  { %v782_v43 = vpop.xlane.xlu0 %781 }
 0x167   :  { %807 = vst.msk [vmem:[%s1252_s3 + $0x18] sm:$0xff] %vm803_vm0, %v782_v43 }
 0x16a   :  { %v792_v52 = vpop.xlane.xlu0 %791 }
 0x16b   :  { %809 = vst.msk [vmem:[%s1252_s3 + $0x28] sm:$0xff] %vm803_vm0, %v792_v52 }
 0x16e   :  { %v802_v29 = vpop.xlane.xlu0 %801 }
 0x16f   :  { %811 = vst.msk [vmem:[%s1252_s3 + $0x38] sm:$0xff] %vm803_vm0, %v802_v29 }

</bundles_post_ra>
